<compile_context>
chip_gen: v7x
topology: tpu7x:2x2x1
jax: 0.10.0
libtpu: 0.0.40
codegen_flags: <defaults>
</compile_context>

<pallas_src>
import jax
import jax.numpy as jnp
from jax import lax
from jax.experimental import pallas as pl
from jax.experimental.pallas import tpu as pltpu

KH = 3
KW = 3
STRIDE = 2
PAD = 1


def conv2d_mm_kernel(p_ref, w_ref, b_ref, o_ref):
    """p_ref: (K, T)  w_ref: (Cout, K)  b_ref: (Cout, 1)  o_ref: (Cout, T)

    K = Cin*KH*KW (18), T = lane tile of the flattened N*Ho*Wo axis.
    Single MXU push, bias broadcast over lanes on the VPU.
    """
    o_ref[...] = (
        jnp.dot(w_ref[...], p_ref[...], preferred_element_type=jnp.float32)
        + b_ref[...]
    )


def conv2d_stride2(x_nchw, w_oihw, bias):
    """Equivalent of nn.Conv2d(2, 4, 3, stride=2, padding=1, bias=True).forward."""
    n, cin, h, w = x_nchw.shape
    cout = w_oihw.shape[0]
    ho = (h + 2 * PAD - KH) // STRIDE + 1
    wo = (w + 2 * PAD - KW) // STRIDE + 1
    nhw = n * ho * wo
    k_dim = cin * KH * KW

    # ---- wrapper glue: im2col (layout only, no compute) ----
    x_pad = jnp.pad(x_nchw, ((0, 0), (0, 0), (PAD, PAD), (PAD, PAD)))
    taps = []
    for kh in range(KH):
        for kw in range(KW):
            taps.append(
                x_pad[:, :,
                      kh:kh + STRIDE * (ho - 1) + 1:STRIDE,
                      kw:kw + STRIDE * (wo - 1) + 1:STRIDE]      # (N, Cin, Ho, Wo)
            )
    p = jnp.stack(taps, axis=0)                                   # (9, N, Cin, Ho, Wo)
    p = jnp.transpose(p, (2, 0, 1, 3, 4))                         # (Cin, 9, N, Ho, Wo)
    p = p.reshape(k_dim, nhw).astype(jnp.float32)                 # contraction idx = cin*9 + kh*3 + kw

    # Pad the flattened spatial axis to a multiple of the lane tile (128-dense stores).
    lane_tile = min(512, ((nhw + 127) // 128) * 128)
    nhw_pad = pl.cdiv(nhw, lane_tile) * lane_tile
    if nhw_pad != nhw:
        p = jnp.pad(p, ((0, 0), (0, nhw_pad - nhw)))

    w2d = w_oihw.reshape(cout, k_dim).astype(jnp.float32)         # (Cout, 18), same index order
    b2d = bias.reshape(cout, 1).astype(jnp.float32)               # (Cout, 1)

    out2d = pl.pallas_call(
        conv2d_mm_kernel,
        out_shape=jax.ShapeDtypeStruct((cout, nhw_pad), jnp.float32),
        grid=(nhw_pad // lane_tile,),
        in_specs=[
            pl.BlockSpec((k_dim, lane_tile), lambda j: (0, j)),
            pl.BlockSpec((cout, k_dim), lambda j: (0, 0)),
            pl.BlockSpec((cout, 1), lambda j: (0, 0)),
        ],
        out_specs=pl.BlockSpec((cout, lane_tile), lambda j: (0, j)),
        compiler_params=pltpu.CompilerParams(
            dimension_semantics=("parallel",)),
    )(p, w2d, b2d)

    out = out2d[:, :nhw].reshape(cout, n, ho, wo)                 # (Cout, N, Ho, Wo)
    return jnp.transpose(out, (1, 0, 2, 3))                       # back to NCHW


if __name__ == "__main__":
    key = jax.random.PRNGKey(0)
    kx, kw_, kb = jax.random.split(key, 3)

    N, CIN, H, W = 2, 2, 16, 16
    COUT = 4

    x = jax.random.normal(kx, (N, CIN, H, W), jnp.float32)

    # Deterministic init mimicking PyTorch Conv2d default (uniform +/- 1/sqrt(fan_in)).
    fan_in = CIN * KH * KW
    bound = 1.0 / (fan_in ** 0.5)
    weight = jax.random.uniform(kw_, (COUT, CIN, KH, KW), jnp.float32, -bound, bound)
    bias = jax.random.uniform(kb, (COUT,), jnp.float32, -bound, bound)

    out = conv2d_stride2(x, weight, bias)
    out = jax.block_until_ready(out)

    # Reference check against XLA's conv (same semantics as the PyTorch module).
    ref = lax.conv_general_dilated(
        x, weight, window_strides=(STRIDE, STRIDE),
        padding=((PAD, PAD), (PAD, PAD)),
        dimension_numbers=("NCHW", "OIHW", "NCHW"),
    ) + bias[None, :, None, None]

    assert out.shape == (N, COUT, H // 2, W // 2), out.shape
    assert jnp.allclose(out, ref, atol=1e-5, rtol=1e-5), "mismatch vs reference conv"

    print("KERNEL_OK")
</pallas_src>

<mosaic_0001>
module attributes {stable_mosaic.version = 11 : i64} {
  func.func @conv2d_mm_kernel(%arg0: i32, %arg1: memref<18x128xf32, #tpu.memory_space<vmem>>, %arg2: memref<4x18xf32, #tpu.memory_space<vmem>>, %arg3: memref<4x1xf32, #tpu.memory_space<vmem>>, %arg4: memref<4x128xf32, #tpu.memory_space<vmem>>) attributes {dimension_semantics = [#tpu.dimension_semantics<parallel>], iteration_bounds = array<i64: 1>, scalar_prefetch = 0 : i64, scratch_operands = 0 : i64, tpu.core_type = #tpu.core_type<tc>, window_params = [{transform_indices = @transform_0, window_bounds = array<i64: 18, 128>}, {pipeline_mode = #tpu.pipeline_mode<synchronous>, transform_indices = @transform_1, window_bounds = array<i64: 4, 18>}, {pipeline_mode = #tpu.pipeline_mode<synchronous>, transform_indices = @transform_2, window_bounds = array<i64: 4, 1>}, {transform_indices = @transform_3, window_bounds = array<i64: 4, 128>}]} {
    %c0 = arith.constant 0 : index
    %c0_0 = arith.constant 0 : index
    %0 = vector.load %arg2[%c0, %c0_0] : memref<4x18xf32, #tpu.memory_space<vmem>>, vector<4x18xf32>
    %c0_1 = arith.constant 0 : index
    %c0_2 = arith.constant 0 : index
    %1 = vector.load %arg1[%c0_1, %c0_2] : memref<18x128xf32, #tpu.memory_space<vmem>>, vector<18x128xf32>
    %cst = arith.constant dense<0.000000e+00> : vector<4x128xf32>
    %2 = tpu.matmul %0, %1, %cst {dimension_numbers = #tpu.dot_dimension_numbers<[1], [0], [0], [1], [0, 0, 1, 1], [], []>} : vector<4x18xf32>, vector<18x128xf32>, vector<4x128xf32> -> vector<4x128xf32>
    %c0_3 = arith.constant 0 : index
    %c0_4 = arith.constant 0 : index
    %3 = vector.load %arg3[%c0_3, %c0_4] : memref<4x1xf32, #tpu.memory_space<vmem>>, vector<4x1xf32>
    %4 = vector.broadcast %3 : vector<4x1xf32> to vector<4x128xf32>
    %5 = arith.addf %2, %4 : vector<4x128xf32>
    %c0_5 = arith.constant 0 : index
    %c0_6 = arith.constant 0 : index
    %6 = vector.load %arg4[%c0_5, %c0_6] : memref<4x128xf32, #tpu.memory_space<vmem>>, vector<4x128xf32>
    tpu.vector_store %arg4[%c0_5, %c0_6], %5 {strides = array<i32>} : memref<4x128xf32, #tpu.memory_space<vmem>>, vector<4x128xf32>,
    return
  }
  func.func @transform_0(%arg0: i32) -> (i32, i32) {
    %c0_i32 = arith.constant 0 : i32
    %c0_i32_0 = arith.constant 0 : i32
    return %c0_i32, %arg0 : i32, i32
  }
  func.func @transform_1(%arg0: i32) -> (i32, i32) {
    %c0_i32 = arith.constant 0 : i32
    %c0_i32_0 = arith.constant 0 : i32
    %c0_i32_1 = arith.constant 0 : i32
    return %c0_i32, %c0_i32_0 : i32, i32
  }
  func.func @transform_2(%arg0: i32) -> (i32, i32) {
    %c0_i32 = arith.constant 0 : i32
    %c0_i32_0 = arith.constant 0 : i32
    %c0_i32_1 = arith.constant 0 : i32
    return %c0_i32, %c0_i32_0 : i32, i32
  }
  func.func @transform_3(%arg0: i32) -> (i32, i32) {
    %c0_i32 = arith.constant 0 : i32
    %c0_i32_0 = arith.constant 0 : i32
    return %c0_i32, %arg0 : i32, i32
  }
}

</mosaic_0001>

<bundles_post_ra>
// kernel: tpu_custom_call.1
= control target key start
LH: loop header
LB: loop body
LE: loop exit
PB: predicated region body
PF: predicated region fallthrough
CT: control target
= control target key end

     0   :  { %8 = vsyncpa [#allocation3], 0  ;;  %s266_s0 = inlined_call_operand.hbm [shape: f32[18,128], index: 0, kind: input, shape index: {}]   ;;  %s267_s1 = inlined_call_operand.vmem [shape: f32[4,18], index: 1, kind: input, shape index: {}]   ;;  %s268_s2 = inlined_call_operand.vmem [shape: f32[4,1], index: 2, kind: input, shape index: {}]   ;;  %s269_s3 = inlined_call_operand.hbm [shape: f32[4,128], index: 3, kind: output, shape index: {}]  }
   0x1   :  { %9 = vsyncpa [#allocation4], 0  ;;  %s208_s12 = smov [#allocation2]   ;;  %s160_s16 = scalar_lea.hbm %s266_s0, 384 }
   0x2   :  { %s15_s13 = sshll.u32 %s208_s12, 4  ;;  %p161_p0 = scmp.ne.s32.totalorder %s266_s0, %s160_s16  ;;  %s16_s13 = int_to_ptr.vmem [resolvable:$true] %s15_s13 }
   0x3   :  { %p164_p1 = scmp.lt.u32.totalorder %s160_s16, %s266_s0 }
   0x5   :  { %p166_p2 = pnand %p164_p1, %p161_p0 }
   0x7   :  { %169 = shalt.err (!%p166_p2)
}
   0x8   :  { %s170_s21 = scalar_lea.vmem %s16_s13, 384  ;;  %p175_p4 = scmp.lt.s32.totalorder %s16_s13, %s16_s13 }
   0x9   :  { %p171_p3 = scmp.ne.s32.totalorder %s16_s13, %s170_s21  ;;  %p176_p5 = scmp.lt.s32.totalorder %s170_s21, %s170_s21 }
   0xb   :  { %p177_p6 = por %p176_p5, %p175_p4 }
   0xd   :  { %p178_p7 = pnand %p177_p6, %p171_p3 }
   0xf   :  { %181 = shalt.err (!%p178_p7)
}
  0x10   :  { %s209_s22 = smov 128   ;;  %s210_s23 = smov 8  }
  0x11   :  { %21 = dma.hbm_to_vmem [thread:$0]  %s266_s0, 384, %s16_s13, [#allocation3], %s209_s22, %s209_s22, %s210_s23  }
  0x12   :  { %204 = dma.done.wait [#allocation3], 384  }
  0x13   :  { %205 = vsyncadd [#allocation3], 4294966912  ;;  %v211_v0 = vmov 0.0|0.0   ;;  %vm212_vm0 = vmmov 0   ;;  %v213_v1 = vmov 0.0   ;;  %v214_v2 = vmov 0  }
  0x14   :  { %148 = vmatprep.subr.bf16.mxu0 %v211_v0  ;;  %145 = vmatprep.mubr.msk.f32.mxu0 %vm212_vm0, %v213_v1  ;;  %v30_v3 = vld [vmem:[#allocation2] sm:$0xff]  ;;  %v31_v4 = vld [vmem:[#allocation2 + $0x8] sm:$0xff]  ;;  %v32_v7 = vld [vmem:[#allocation2 + $0x10] sm:$0x3]  ;;  %vm43_vm1 = vcmask 1041408   ;;  %vm39_vm2 = vcmask 146432  }
  0x15   :  { %159 = vset.pattern.permute.xlu0 %v214_v2  ;;  %v149_v5 = vpack.c.bf16 %v31_v4, %v30_v3  ;;  %v33_v6 = vld [vmem:[%s268_s2] sm:$0xf]  ;;  %s215_s29 = smov [#allocation5]  }
  0x16   :  { %36 = vperm.xlu0 %159, %v33_v6   ;;  %v29_v8 = vld [vmem:[%s267_s1] sm:$0xf]  ;;  %s124_s30 = sshll.u32 %s215_s29, 4  ;;  %s125_s30 = int_to_ptr.vmem [resolvable:$true] %s124_s30 }
  0x17   :  { %150 = vmatpush3.bf16.msra.mxu0 %v149_v5  ;;  %s182_s2 = scalar_lea.vmem %s125_s30, 64  ;;  %p187_p9 = scmp.lt.s32.totalorder %s125_s30, %s125_s30 }
  0x18   :  { %143 = vmatprep.subr.mxu0 %v213_v1  ;;  %p183_p8 = scmp.ne.s32.totalorder %s125_s30, %s182_s2  ;;  %p188_p10 = scmp.lt.s32.totalorder %s182_s2, %s182_s2 }
  0x1a   :  { %p189_p11 = por %p188_p10, %p187_p9 }
  0x1b   :  { %144 = vmatpush3.msk.msra.mxu0 %vm43_vm1, %v32_v7 }
  0x1c   :  { %146 = vmatmul.mubr.msk.f32.vlgmr.msra.gmra.mrb[0].mxu0 %vm39_vm2, %v29_v8  ;;  %p190_p12 = pnand %p189_p11, %p183_p8 }
  0x95   :  { %v37_v9 = vpop.permute.xlu0 %36 }
  0xef   :  { %v113_v10 = vpop.f32.mrb[0].mxu0 }
  0xf0   :  { %v114_v11 = vadd.f32 %v113_v10, %v37_v9  ;;  %v147_v12 = vpop.f32.mrb[1].mxu0 }
  0xf2   :  { %117 = vst [vmem:[#allocation5] sm:$0xf] %v114_v11 }
  0xf3   :  { %193 = shalt.err (!%p190_p12)
}
  0xf4   :  { %s194_s5 = scalar_lea.hbm %s269_s3, 64 }
  0xf5   :  { %p195_p13 = scmp.ne.s32.totalorder %s269_s3, %s194_s5  ;;  %p198_p0 = scmp.lt.u32.totalorder %s194_s5, %s269_s3 }
  0xf7   :  { %p200_p1 = pnand %p198_p0, %p195_p13 }
  0xf9   :  { %203 = shalt.err (!%p200_p1)
}
  0xfa   :  { %127 = dma.vmem_to_hbm [thread:$0]  %s125_s30, 64, %s269_s3, [#allocation4]  }
  0xfb   :  { %206 = dma.done.wait [#allocation4], 64  }
  0xfc   :  { %207 = vsyncadd [#allocation4], 4294967232 }
  0xfd   :  { %131 = vsyncpa [#allocation3], 1 }
  0xfe   :  { %132 = vsyncpa [#allocation4], 1 }

</bundles_post_ra>
